<compile_context>
chip_gen: v6e
topology: v6e:2x2x1
jax: 0.10.0
libtpu: 0.0.40
codegen_flags: <defaults>
</compile_context>

<pallas_src>
import math

import jax
import jax.numpy as jnp
from jax.experimental import pallas as pl
from jax.experimental.pallas import tpu as pltpu


def _make_vmlp_kernel(num_masked):
    """Kernel for num_masked masked+ReLU layers followed by one plain layer."""

    def kernel(nact_ref,        # SMEM int32[(num_masked,)] scalar prefetch
               x_ref,           # f32 (TB, in_size)   -- cast to bf16 in-kernel
               *refs):          # w0,b0,...,wL,bL, o_ref
        o_ref = refs[-1]
        wb = refs[:-1]          # alternating (w, b), len == 2 * (num_masked + 1)

        # In-kernel bf16 cast of the activations (VPU, hidden under MXU slack).
        h = x_ref[...].astype(jnp.bfloat16)

        hid_p = wb[0].shape[1]
        # Small (1, hid_p) iota, hoisted out of the layer loop; the compare /
        # select broadcasts it across the batch sublanes for free.
        col = jax.lax.broadcasted_iota(jnp.int32, (1, hid_p), 1)

        for idx in range(num_masked):
            w_ref, b_ref = wb[2 * idx], wb[2 * idx + 1]
            # bf16 matmul, f32 accumulation; bias add in f32.
            y = jnp.dot(h, w_ref[...], preferred_element_type=jnp.float32) + b_ref[...]
            # Fused variable-width mask + ReLU (masked lanes are 0 either way),
            # then cast back to bf16 for the next MXU pass.
            h = jnp.where(col < nact_ref[idx], jnp.maximum(y, 0.0), 0.0
                          ).astype(jnp.bfloat16)

        # Final layer: mask = 1.0 -> all output units, no ReLU.
        w_ref, b_ref = wb[-2], wb[-1]
        o_ref[...] = (jnp.dot(h, w_ref[...], preferred_element_type=jnp.float32)
                      + b_ref[...]).astype(o_ref.dtype)

    return kernel


def _round_up(n, m):
    return ((n + m - 1) // m) * m


def _pad2(a, rows, cols):
    return jnp.pad(a, ((0, rows - a.shape[0]), (0, cols - a.shape[1])))


def prepare_vmlp_params(params, *, lane=128):
    """One-time weight prep: pad feature dims to lane multiples, cast to bf16.

    Layer-0 fan_in stays unpadded (it matches x's full-extent last dim); all
    other feature dims are padded to multiples of 128 with zeros, so padded
    lanes stay exactly 0 through bias / ReLU / downstream matmuls.
    """
    prepped = []
    for li, (w, b) in enumerate(params):
        fan_in, fan_out = w.shape
        in_p = fan_in if li == 0 else _round_up(fan_in, lane)
        out_p = _round_up(fan_out, lane)
        wp = _pad2(w, in_p, out_p).astype(jnp.bfloat16)
        bp = _pad2(b.reshape(1, -1), 1, out_p).astype(jnp.float32)
        prepped.append((wp, bp))
    return prepped


def vmlp_forward(x, prepped_params, n_active, *, batch_tile=256):
    """x: (B, input_size) f32.  prepped_params: output of prepare_vmlp_params.
    n_active: int32[(num_masked,)] active-unit counts per masked layer."""
    B, in_size = x.shape
    num_masked = len(prepped_params) - 1
    hid_p = prepped_params[0][0].shape[1]
    out_p = prepped_params[-1][0].shape[1]
    out_size_hint = out_p  # caller slices to true output_size
    assert prepped_params[0][0].shape[0] == in_size, "layer-0 fan_in mismatch"

    # Minimal batch pad to a sublane multiple of 8 (no dtype cast, no pad to TB).
    B8 = _round_up(max(B, 8), 8)
    if B8 != B:
        x = jnp.pad(x, ((0, B8 - B), (0, 0)))

    TB = min(batch_tile, B8)
    TB = _round_up(TB, 8)
    grid_b = pl.cdiv(B8, TB)   # ragged last tile: OOB reads are per-row garbage
                               # (rows are independent), OOB writes are masked.

    wb = []
    for w, b in prepped_params:
        wb.extend((w, b))

    # --- VMEM budget: resident weights (single-buffered) + pipelined tiles ---
    weight_bytes = sum(int(a.size) * a.dtype.itemsize for a in wb)
    x_tile_bytes = 2 * TB * in_size * 4          # double-buffered f32 input tile
    out_tile_bytes = 2 * TB * out_p * 4          # double-buffered f32 output tile
    interm_bytes = 2 * TB * hid_p * (4 + 2)      # y (f32) + h (bf16), with slack
    needed = weight_bytes + x_tile_bytes + out_tile_bytes + interm_bytes
    vmem_limit = int(min(max(needed * 1.5 + (1 << 20), 32 << 20), 100 << 20))

    def build_and_call(weight_pipeline_mode):
        in_specs = [pl.BlockSpec((TB, in_size), lambda i, nact: (i, 0))]
        for arr in wb:
            # Constant index_map -> block stays resident across all grid steps;
            # single-buffered so it does not pay a pointless second copy.
            in_specs.append(
                pl.BlockSpec(arr.shape, lambda i, nact: (0, 0),
                             pipeline_mode=weight_pipeline_mode))
        grid_spec = pltpu.PrefetchScalarGridSpec(
            num_scalar_prefetch=1,
            grid=(grid_b,),
            in_specs=in_specs,
            out_specs=pl.BlockSpec((TB, out_p), lambda i, nact: (i, 0)),
        )
        return pl.pallas_call(
            _make_vmlp_kernel(num_masked),
            out_shape=jax.ShapeDtypeStruct((B8, out_p), jnp.float32),
            grid_spec=grid_spec,
            compiler_params=pltpu.CompilerParams(
                # Batch tiles are independent -> shard across TensorCores.
                dimension_semantics=("parallel",),
                vmem_limit_bytes=vmem_limit),
        )(n_active, x, *wb)

    try:
        out_padded = build_and_call(pl.Buffered(1))
    except Exception:
        # Fallback: default double-buffering if single-buffering is rejected.
        out_padded = build_and_call(None)

    return out_padded[:B, :out_size_hint]


def init_vmlp_params(key, input_size, hidden_size, output_size, hidden_layers=2):
    """Deterministic init mirroring torch.nn.Linear default U(-1/sqrt(in), 1/sqrt(in))."""
    sizes = [input_size] + [hidden_size] * (hidden_layers + 1) + [output_size]
    params = []
    for fan_in, fan_out in zip(sizes[:-1], sizes[1:]):
        key, kw, kb = jax.random.split(key, 3)
        bound = 1.0 / math.sqrt(fan_in)
        w = jax.random.uniform(kw, (fan_in, fan_out), jnp.float32, -bound, bound)
        b = jax.random.uniform(kb, (1, fan_out), jnp.float32, -bound, bound)
        params.append((w, b))
    return params


def vmlp_reference(x, params, n_active):
    """Pure-JAX reference mirroring the kernel's bf16-matmul / f32-accumulate path."""
    h = x.astype(jnp.bfloat16)
    for idx, (w, b) in enumerate(params[:-1]):
        y = jnp.dot(h, w.astype(jnp.bfloat16),
                    preferred_element_type=jnp.float32) + b
        col = jnp.arange(y.shape[1])[None, :]
        h = jnp.where(col < n_active[idx], jnp.maximum(y, 0.0), 0.0
                      ).astype(jnp.bfloat16)
    w, b = params[-1]
    return jnp.dot(h, w.astype(jnp.bfloat16),
                   preferred_element_type=jnp.float32) + b


if __name__ == "__main__":
    # NOTE: at these toy sizes the call is pure launch/DMA-setup latency; the
    # tiling / bf16 / VMEM-budget work only pays off at realistic widths.
    input_size, hidden_size, output_size, hidden_layers = 16, 32, 8, 2
    batch = 8

    key = jax.random.PRNGKey(0)
    key, kx = jax.random.split(key)
    x = jax.random.normal(kx, (batch, input_size), jnp.float32)

    params = init_vmlp_params(key, input_size, hidden_size, output_size, hidden_layers)
    # One-time weight preparation (pad + bf16 cast), reused across forward calls.
    prepped = prepare_vmlp_params(params)

    # mask = -1 (default) -> full width on every masked layer (deterministic path).
    n_active = jnp.full((hidden_layers + 1,), hidden_size, dtype=jnp.int32)

    out_padded = vmlp_forward(x, prepped, n_active)
    out_padded = jax.block_until_ready(out_padded)
    out = out_padded[:, :output_size]

    ref = vmlp_reference(x, params, n_active)
    assert out.shape == (batch, output_size)
    assert jnp.allclose(out, ref, atol=1e-2, rtol=1e-2), "mismatch vs JAX reference"

    print("KERNEL_OK")
</pallas_src>

<mosaic_0001>
module attributes {stable_mosaic.version = 11 : i64} {
  func.func @kernel(%arg0: i32, %arg1: memref<3xi32, #tpu.memory_space<smem>>, %arg2: memref<8x16xf32, #tpu.memory_space<vmem>>, %arg3: memref<16x128xbf16, #tpu.memory_space<vmem>>, %arg4: memref<1x128xf32, #tpu.memory_space<vmem>>, %arg5: memref<128x128xbf16, #tpu.memory_space<vmem>>, %arg6: memref<1x128xf32, #tpu.memory_space<vmem>>, %arg7: memref<128x128xbf16, #tpu.memory_space<vmem>>, %arg8: memref<1x128xf32, #tpu.memory_space<vmem>>, %arg9: memref<128x128xbf16, #tpu.memory_space<vmem>>, %arg10: memref<1x128xf32, #tpu.memory_space<vmem>>, %arg11: memref<8x128xf32, #tpu.memory_space<vmem>>) attributes {dimension_semantics = [#tpu.dimension_semantics<parallel>], iteration_bounds = array<i64: 1>, scalar_prefetch = 1 : i64, scratch_operands = 0 : i64, tpu.core_type = #tpu.core_type<tc>, window_params = [{transform_indices = @transform_0, window_bounds = array<i64: 8, 16>}, {pipeline_mode = #tpu.pipeline_mode<synchronous>, transform_indices = @transform_1, window_bounds = array<i64: 16, 128>}, {pipeline_mode = #tpu.pipeline_mode<synchronous>, transform_indices = @transform_2, window_bounds = array<i64: 1, 128>}, {pipeline_mode = #tpu.pipeline_mode<synchronous>, transform_indices = @transform_3, window_bounds = array<i64: 128, 128>}, {pipeline_mode = #tpu.pipeline_mode<synchronous>, transform_indices = @transform_4, window_bounds = array<i64: 1, 128>}, {pipeline_mode = #tpu.pipeline_mode<synchronous>, transform_indices = @transform_5, window_bounds = array<i64: 128, 128>}, {pipeline_mode = #tpu.pipeline_mode<synchronous>, transform_indices = @transform_6, window_bounds = array<i64: 1, 128>}, {pipeline_mode = #tpu.pipeline_mode<synchronous>, transform_indices = @transform_7, window_bounds = array<i64: 128, 128>}, {pipeline_mode = #tpu.pipeline_mode<synchronous>, transform_indices = @transform_8, window_bounds = array<i64: 1, 128>}, {transform_indices = @transform_9, window_bounds = array<i64: 8, 128>}]} {
    %c0 = arith.constant 0 : index
    %c0_0 = arith.constant 0 : index
    %0 = vector.load %arg2[%c0, %c0_0] : memref<8x16xf32, #tpu.memory_space<vmem>>, vector<8x16xf32>
    %1 = arith.truncf %0 : vector<8x16xf32> to vector<8x16xbf16>
    %2 = tpu.iota {dimensions = array<i32: 1>} : vector<1x128xi32>
    %c0_1 = arith.constant 0 : index
    %c0_2 = arith.constant 0 : index
    %3 = vector.load %arg3[%c0_1, %c0_2] : memref<16x128xbf16, #tpu.memory_space<vmem>>, vector<16x128xbf16>
    %cst = arith.constant dense<0.000000e+00> : vector<8x128xf32>
    %4 = tpu.matmul %1, %3, %cst {dimension_numbers = #tpu.dot_dimension_numbers<[1], [0], [0], [1], [0, 0, 1, 1], [], []>} : vector<8x16xbf16>, vector<16x128xbf16>, vector<8x128xf32> -> vector<8x128xf32>
    %c0_3 = arith.constant 0 : index
    %c0_4 = arith.constant 0 : index
    %5 = vector.load %arg4[%c0_3, %c0_4] : memref<1x128xf32, #tpu.memory_space<vmem>>, vector<1x128xf32>
    %6 = vector.broadcast %5 : vector<1x128xf32> to vector<8x128xf32>
    %7 = arith.addf %4, %6 : vector<8x128xf32>
    %c0_5 = arith.constant 0 : index
    %8 = memref.load %arg1[%c0_5] : memref<3xi32, #tpu.memory_space<smem>>
    %9 = vector.broadcast %8 : i32 to vector<1x128xi32>
    %10 = arith.cmpi slt, %2, %9 : vector<1x128xi32>
    %cst_6 = arith.constant 0.000000e+00 : f32
    %11 = vector.broadcast %cst_6 : f32 to vector<8x128xf32>
    %12 = arith.maximumf %7, %11 : vector<8x128xf32>
    %cst_7 = arith.constant 0.000000e+00 : f32
    %13 = vector.shape_cast %10 : vector<1x128xi1> to vector<1x128xi1>
    %14 = vector.broadcast %13 : vector<1x128xi1> to vector<8x128xi1>
    %15 = vector.broadcast %cst_7 : f32 to vector<8x128xf32>
    %16 = arith.select %14, %12, %15 : vector<8x128xi1>, vector<8x128xf32>
    %17 = arith.truncf %16 : vector<8x128xf32> to vector<8x128xbf16>
    %c0_8 = arith.constant 0 : index
    %c0_9 = arith.constant 0 : index
    %18 = vector.load %arg5[%c0_8, %c0_9] : memref<128x128xbf16, #tpu.memory_space<vmem>>, vector<128x128xbf16>
    %cst_10 = arith.constant dense<0.000000e+00> : vector<8x128xf32>
    %19 = tpu.matmul %17, %18, %cst_10 {dimension_numbers = #tpu.dot_dimension_numbers<[1], [0], [0], [1], [0, 0, 1, 1], [], []>} : vector<8x128xbf16>, vector<128x128xbf16>, vector<8x128xf32> -> vector<8x128xf32>
    %c0_11 = arith.constant 0 : index
    %c0_12 = arith.constant 0 : index
    %20 = vector.load %arg6[%c0_11, %c0_12] : memref<1x128xf32, #tpu.memory_space<vmem>>, vector<1x128xf32>
    %21 = vector.broadcast %20 : vector<1x128xf32> to vector<8x128xf32>
    %22 = arith.addf %19, %21 : vector<8x128xf32>
    %c1 = arith.constant 1 : index
    %23 = memref.load %arg1[%c1] : memref<3xi32, #tpu.memory_space<smem>>
    %24 = vector.broadcast %23 : i32 to vector<1x128xi32>
    %25 = arith.cmpi slt, %2, %24 : vector<1x128xi32>
    %cst_13 = arith.constant 0.000000e+00 : f32
    %26 = vector.broadcast %cst_13 : f32 to vector<8x128xf32>
    %27 = arith.maximumf %22, %26 : vector<8x128xf32>
    %cst_14 = arith.constant 0.000000e+00 : f32
    %28 = vector.shape_cast %25 : vector<1x128xi1> to vector<1x128xi1>
    %29 = vector.broadcast %28 : vector<1x128xi1> to vector<8x128xi1>
    %30 = vector.broadcast %cst_14 : f32 to vector<8x128xf32>
    %31 = arith.select %29, %27, %30 : vector<8x128xi1>, vector<8x128xf32>
    %32 = arith.truncf %31 : vector<8x128xf32> to vector<8x128xbf16>
    %c0_15 = arith.constant 0 : index
    %c0_16 = arith.constant 0 : index
    %33 = vector.load %arg7[%c0_15, %c0_16] : memref<128x128xbf16, #tpu.memory_space<vmem>>, vector<128x128xbf16>
    %cst_17 = arith.constant dense<0.000000e+00> : vector<8x128xf32>
    %34 = tpu.matmul %32, %33, %cst_17 {dimension_numbers = #tpu.dot_dimension_numbers<[1], [0], [0], [1], [0, 0, 1, 1], [], []>} : vector<8x128xbf16>, vector<128x128xbf16>, vector<8x128xf32> -> vector<8x128xf32>
    %c0_18 = arith.constant 0 : index
    %c0_19 = arith.constant 0 : index
    %35 = vector.load %arg8[%c0_18, %c0_19] : memref<1x128xf32, #tpu.memory_space<vmem>>, vector<1x128xf32>
    %36 = vector.broadcast %35 : vector<1x128xf32> to vector<8x128xf32>
    %37 = arith.addf %34, %36 : vector<8x128xf32>
    %c2 = arith.constant 2 : index
    %38 = memref.load %arg1[%c2] : memref<3xi32, #tpu.memory_space<smem>>
    %39 = vector.broadcast %38 : i32 to vector<1x128xi32>
    %40 = arith.cmpi slt, %2, %39 : vector<1x128xi32>
    %cst_20 = arith.constant 0.000000e+00 : f32
    %41 = vector.broadcast %cst_20 : f32 to vector<8x128xf32>
    %42 = arith.maximumf %37, %41 : vector<8x128xf32>
    %cst_21 = arith.constant 0.000000e+00 : f32
    %43 = vector.shape_cast %40 : vector<1x128xi1> to vector<1x128xi1>
    %44 = vector.broadcast %43 : vector<1x128xi1> to vector<8x128xi1>
    %45 = vector.broadcast %cst_21 : f32 to vector<8x128xf32>
    %46 = arith.select %44, %42, %45 : vector<8x128xi1>, vector<8x128xf32>
    %47 = arith.truncf %46 : vector<8x128xf32> to vector<8x128xbf16>
    %c0_22 = arith.constant 0 : index
    %c0_23 = arith.constant 0 : index
    %48 = vector.load %arg9[%c0_22, %c0_23] : memref<128x128xbf16, #tpu.memory_space<vmem>>, vector<128x128xbf16>
    %cst_24 = arith.constant dense<0.000000e+00> : vector<8x128xf32>
    %49 = tpu.matmul %47, %48, %cst_24 {dimension_numbers = #tpu.dot_dimension_numbers<[1], [0], [0], [1], [0, 0, 1, 1], [], []>} : vector<8x128xbf16>, vector<128x128xbf16>, vector<8x128xf32> -> vector<8x128xf32>
    %c0_25 = arith.constant 0 : index
    %c0_26 = arith.constant 0 : index
    %50 = vector.load %arg10[%c0_25, %c0_26] : memref<1x128xf32, #tpu.memory_space<vmem>>, vector<1x128xf32>
    %51 = vector.broadcast %50 : vector<1x128xf32> to vector<8x128xf32>
    %52 = arith.addf %49, %51 : vector<8x128xf32>
    %c0_27 = arith.constant 0 : index
    %c0_28 = arith.constant 0 : index
    %53 = vector.load %arg11[%c0_27, %c0_28] : memref<8x128xf32, #tpu.memory_space<vmem>>, vector<8x128xf32>
    tpu.vector_store %arg11[%c0_27, %c0_28], %52 {strides = array<i32>} : memref<8x128xf32, #tpu.memory_space<vmem>>, vector<8x128xf32>,
    return
  }
  func.func @transform_0(%arg0: i32, %arg1: memref<3xi32, #tpu.memory_space<smem>>) -> (i32, i32) {
    %c0_i32 = arith.constant 0 : i32
    %c0_i32_0 = arith.constant 0 : i32
    return %arg0, %c0_i32 : i32, i32
  }
  func.func @transform_1(%arg0: i32, %arg1: memref<3xi32, #tpu.memory_space<smem>>) -> (i32, i32) {
    %c0_i32 = arith.constant 0 : i32
    %c0_i32_0 = arith.constant 0 : i32
    %c0_i32_1 = arith.constant 0 : i32
    return %c0_i32, %c0_i32_0 : i32, i32
  }
  func.func @transform_2(%arg0: i32, %arg1: memref<3xi32, #tpu.memory_space<smem>>) -> (i32, i32) {
    %c0_i32 = arith.constant 0 : i32
    %c0_i32_0 = arith.constant 0 : i32
    %c0_i32_1 = arith.constant 0 : i32
    return %c0_i32, %c0_i32_0 : i32, i32
  }
  func.func @transform_3(%arg0: i32, %arg1: memref<3xi32, #tpu.memory_space<smem>>) -> (i32, i32) {
    %c0_i32 = arith.constant 0 : i32
    %c0_i32_0 = arith.constant 0 : i32
    %c0_i32_1 = arith.constant 0 : i32
    return %c0_i32, %c0_i32_0 : i32, i32
  }
  func.func @transform_4(%arg0: i32, %arg1: memref<3xi32, #tpu.memory_space<smem>>) -> (i32, i32) {
    %c0_i32 = arith.constant 0 : i32
    %c0_i32_0 = arith.constant 0 : i32
    %c0_i32_1 = arith.constant 0 : i32
    return %c0_i32, %c0_i32_0 : i32, i32
  }
  func.func @transform_5(%arg0: i32, %arg1: memref<3xi32, #tpu.memory_space<smem>>) -> (i32, i32) {
    %c0_i32 = arith.constant 0 : i32
    %c0_i32_0 = arith.constant 0 : i32
    %c0_i32_1 = arith.constant 0 : i32
    return %c0_i32, %c0_i32_0 : i32, i32
  }
  func.func @transform_6(%arg0: i32, %arg1: memref<3xi32, #tpu.memory_space<smem>>) -> (i32, i32) {
    %c0_i32 = arith.constant 0 : i32
    %c0_i32_0 = arith.constant 0 : i32
    %c0_i32_1 = arith.constant 0 : i32
    return %c0_i32, %c0_i32_0 : i32, i32
  }
  func.func @transform_7(%arg0: i32, %arg1: memref<3xi32, #tpu.memory_space<smem>>) -> (i32, i32) {
    %c0_i32 = arith.constant 0 : i32
    %c0_i32_0 = arith.constant 0 : i32
    %c0_i32_1 = arith.constant 0 : i32
    return %c0_i32, %c0_i32_0 : i32, i32
  }
  func.func @transform_8(%arg0: i32, %arg1: memref<3xi32, #tpu.memory_space<smem>>) -> (i32, i32) {
    %c0_i32 = arith.constant 0 : i32
    %c0_i32_0 = arith.constant 0 : i32
    %c0_i32_1 = arith.constant 0 : i32
    return %c0_i32, %c0_i32_0 : i32, i32
  }
  func.func @transform_9(%arg0: i32, %arg1: memref<3xi32, #tpu.memory_space<smem>>) -> (i32, i32) {
    %c0_i32 = arith.constant 0 : i32
    %c0_i32_0 = arith.constant 0 : i32
    return %arg0, %c0_i32 : i32, i32
  }
}

module attributes {stable_mosaic.version = 11 : i64} {
  func.func @kernel(%arg0: i32, %arg1: memref<3xi32, #tpu.memory_space<smem>>, %arg2: memref<8x16xf32, #tpu.memory_space<vmem>>, %arg3: memref<16x128xbf16, #tpu.memory_space<vmem>>, %arg4: memref<1x128xf32, #tpu.memory_space<vmem>>, %arg5: memref<128x128xbf16, #tpu.memory_space<vmem>>, %arg6: memref<1x128xf32, #tpu.memory_space<vmem>>, %arg7: memref<128x128xbf16, #tpu.memory_space<vmem>>, %arg8: memref<1x128xf32, #tpu.memory_space<vmem>>, %arg9: memref<128x128xbf16, #tpu.memory_space<vmem>>, %arg10: memref<1x128xf32, #tpu.memory_space<vmem>>, %arg11: memref<8x128xf32, #tpu.memory_space<vmem>>) attributes {dimension_semantics = [#tpu.dimension_semantics<parallel>], iteration_bounds = array<i64: 1>, scalar_prefetch = 1 : i64, scratch_operands = 0 : i64, tpu.core_type = #tpu.core_type<tc>, window_params = [{transform_indices = @transform_0, window_bounds = array<i64: 8, 16>}, {pipeline_mode = #tpu.pipeline_mode<synchronous>, transform_indices = @transform_1, window_bounds = array<i64: 16, 128>}, {pipeline_mode = #tpu.pipeline_mode<synchronous>, transform_indices = @transform_2, window_bounds = array<i64: 1, 128>}, {pipeline_mode = #tpu.pipeline_mode<synchronous>, transform_indices = @transform_3, window_bounds = array<i64: 128, 128>}, {pipeline_mode = #tpu.pipeline_mode<synchronous>, transform_indices = @transform_4, window_bounds = array<i64: 1, 128>}, {pipeline_mode = #tpu.pipeline_mode<synchronous>, transform_indices = @transform_5, window_bounds = array<i64: 128, 128>}, {pipeline_mode = #tpu.pipeline_mode<synchronous>, transform_indices = @transform_6, window_bounds = array<i64: 1, 128>}, {pipeline_mode = #tpu.pipeline_mode<synchronous>, transform_indices = @transform_7, window_bounds = array<i64: 128, 128>}, {pipeline_mode = #tpu.pipeline_mode<synchronous>, transform_indices = @transform_8, window_bounds = array<i64: 1, 128>}, {transform_indices = @transform_9, window_bounds = array<i64: 8, 128>}]} {
    %c0 = arith.constant 0 : index
    %c0_0 = arith.constant 0 : index
    %0 = vector.load %arg2[%c0, %c0_0] : memref<8x16xf32, #tpu.memory_space<vmem>>, vector<8x16xf32>
    %1 = arith.truncf %0 : vector<8x16xf32> to vector<8x16xbf16>
    %2 = tpu.iota {dimensions = array<i32: 1>} : vector<1x128xi32>
    %c0_1 = arith.constant 0 : index
    %c0_2 = arith.constant 0 : index
    %3 = vector.load %arg3[%c0_1, %c0_2] : memref<16x128xbf16, #tpu.memory_space<vmem>>, vector<16x128xbf16>
    %cst = arith.constant dense<0.000000e+00> : vector<8x128xf32>
    %4 = tpu.matmul %1, %3, %cst {dimension_numbers = #tpu.dot_dimension_numbers<[1], [0], [0], [1], [0, 0, 1, 1], [], []>} : vector<8x16xbf16>, vector<16x128xbf16>, vector<8x128xf32> -> vector<8x128xf32>
    %c0_3 = arith.constant 0 : index
    %c0_4 = arith.constant 0 : index
    %5 = vector.load %arg4[%c0_3, %c0_4] : memref<1x128xf32, #tpu.memory_space<vmem>>, vector<1x128xf32>
    %6 = vector.broadcast %5 : vector<1x128xf32> to vector<8x128xf32>
    %7 = arith.addf %4, %6 : vector<8x128xf32>
    %c0_5 = arith.constant 0 : index
    %8 = memref.load %arg1[%c0_5] : memref<3xi32, #tpu.memory_space<smem>>
    %9 = vector.broadcast %8 : i32 to vector<1x128xi32>
    %10 = arith.cmpi slt, %2, %9 : vector<1x128xi32>
    %cst_6 = arith.constant 0.000000e+00 : f32
    %11 = vector.broadcast %cst_6 : f32 to vector<8x128xf32>
    %12 = arith.maximumf %7, %11 : vector<8x128xf32>
    %cst_7 = arith.constant 0.000000e+00 : f32
    %13 = vector.shape_cast %10 : vector<1x128xi1> to vector<1x128xi1>
    %14 = vector.broadcast %13 : vector<1x128xi1> to vector<8x128xi1>
    %15 = vector.broadcast %cst_7 : f32 to vector<8x128xf32>
    %16 = arith.select %14, %12, %15 : vector<8x128xi1>, vector<8x128xf32>
    %17 = arith.truncf %16 : vector<8x128xf32> to vector<8x128xbf16>
    %c0_8 = arith.constant 0 : index
    %c0_9 = arith.constant 0 : index
    %18 = vector.load %arg5[%c0_8, %c0_9] : memref<128x128xbf16, #tpu.memory_space<vmem>>, vector<128x128xbf16>
    %cst_10 = arith.constant dense<0.000000e+00> : vector<8x128xf32>
    %19 = tpu.matmul %17, %18, %cst_10 {dimension_numbers = #tpu.dot_dimension_numbers<[1], [0], [0], [1], [0, 0, 1, 1], [], []>} : vector<8x128xbf16>, vector<128x128xbf16>, vector<8x128xf32> -> vector<8x128xf32>
    %c0_11 = arith.constant 0 : index
    %c0_12 = arith.constant 0 : index
    %20 = vector.load %arg6[%c0_11, %c0_12] : memref<1x128xf32, #tpu.memory_space<vmem>>, vector<1x128xf32>
    %21 = vector.broadcast %20 : vector<1x128xf32> to vector<8x128xf32>
    %22 = arith.addf %19, %21 : vector<8x128xf32>
    %c1 = arith.constant 1 : index
    %23 = memref.load %arg1[%c1] : memref<3xi32, #tpu.memory_space<smem>>
    %24 = vector.broadcast %23 : i32 to vector<1x128xi32>
    %25 = arith.cmpi slt, %2, %24 : vector<1x128xi32>
    %cst_13 = arith.constant 0.000000e+00 : f32
    %26 = vector.broadcast %cst_13 : f32 to vector<8x128xf32>
    %27 = arith.maximumf %22, %26 : vector<8x128xf32>
    %cst_14 = arith.constant 0.000000e+00 : f32
    %28 = vector.shape_cast %25 : vector<1x128xi1> to vector<1x128xi1>
    %29 = vector.broadcast %28 : vector<1x128xi1> to vector<8x128xi1>
    %30 = vector.broadcast %cst_14 : f32 to vector<8x128xf32>
    %31 = arith.select %29, %27, %30 : vector<8x128xi1>, vector<8x128xf32>
    %32 = arith.truncf %31 : vector<8x128xf32> to vector<8x128xbf16>
    %c0_15 = arith.constant 0 : index
    %c0_16 = arith.constant 0 : index
    %33 = vector.load %arg7[%c0_15, %c0_16] : memref<128x128xbf16, #tpu.memory_space<vmem>>, vector<128x128xbf16>
    %cst_17 = arith.constant dense<0.000000e+00> : vector<8x128xf32>
    %34 = tpu.matmul %32, %33, %cst_17 {dimension_numbers = #tpu.dot_dimension_numbers<[1], [0], [0], [1], [0, 0, 1, 1], [], []>} : vector<8x128xbf16>, vector<128x128xbf16>, vector<8x128xf32> -> vector<8x128xf32>
    %c0_18 = arith.constant 0 : index
    %c0_19 = arith.constant 0 : index
    %35 = vector.load %arg8[%c0_18, %c0_19] : memref<1x128xf32, #tpu.memory_space<vmem>>, vector<1x128xf32>
    %36 = vector.broadcast %35 : vector<1x128xf32> to vector<8x128xf32>
    %37 = arith.addf %34, %36 : vector<8x128xf32>
    %c2 = arith.constant 2 : index
    %38 = memref.load %arg1[%c2] : memref<3xi32, #tpu.memory_space<smem>>
    %39 = vector.broadcast %38 : i32 to vector<1x128xi32>
    %40 = arith.cmpi slt, %2, %39 : vector<1x128xi32>
    %cst_20 = arith.constant 0.000000e+00 : f32
    %41 = vector.broadcast %cst_20 : f32 to vector<8x128xf32>
    %42 = arith.maximumf %37, %41 : vector<8x128xf32>
    %cst_21 = arith.constant 0.000000e+00 : f32
    %43 = vector.shape_cast %40 : vector<1x128xi1> to vector<1x128xi1>
    %44 = vector.broadcast %43 : vector<1x128xi1> to vector<8x128xi1>
    %45 = vector.broadcast %cst_21 : f32 to vector<8x128xf32>
    %46 = arith.select %44, %42, %45 : vector<8x128xi1>, vector<8x128xf32>
    %47 = arith.truncf %46 : vector<8x128xf32> to vector<8x128xbf16>
    %c0_22 = arith.constant 0 : index
    %c0_23 = arith.constant 0 : index
    %48 = vector.load %arg9[%c0_22, %c0_23] : memref<128x128xbf16, #tpu.memory_space<vmem>>, vector<128x128xbf16>
    %cst_24 = arith.constant dense<0.000000e+00> : vector<8x128xf32>
    %49 = tpu.matmul %47, %48, %cst_24 {dimension_numbers = #tpu.dot_dimension_numbers<[1], [0], [0], [1], [0, 0, 1, 1], [], []>} : vector<8x128xbf16>, vector<128x128xbf16>, vector<8x128xf32> -> vector<8x128xf32>
    %c0_25 = arith.constant 0 : index
    %c0_26 = arith.constant 0 : index
    %50 = vector.load %arg10[%c0_25, %c0_26] : memref<1x128xf32, #tpu.memory_space<vmem>>, vector<1x128xf32>
    %51 = vector.broadcast %50 : vector<1x128xf32> to vector<8x128xf32>
    %52 = arith.addf %49, %51 : vector<8x128xf32>
    %c0_27 = arith.constant 0 : index
    %c0_28 = arith.constant 0 : index
    %53 = vector.load %arg11[%c0_27, %c0_28] : memref<8x128xf32, #tpu.memory_space<vmem>>, vector<8x128xf32>
    tpu.vector_store %arg11[%c0_27, %c0_28], %52 {strides = array<i32>} : memref<8x128xf32, #tpu.memory_space<vmem>>, vector<8x128xf32>,
    return
  }
  func.func @transform_0(%arg0: i32, %arg1: memref<3xi32, #tpu.memory_space<smem>>) -> (i32, i32) {
    %c0_i32 = arith.constant 0 : i32
    %c0_i32_0 = arith.constant 0 : i32
    return %arg0, %c0_i32 : i32, i32
  }
  func.func @transform_1(%arg0: i32, %arg1: memref<3xi32, #tpu.memory_space<smem>>) -> (i32, i32) {
    %c0_i32 = arith.constant 0 : i32
    %c0_i32_0 = arith.constant 0 : i32
    %c0_i32_1 = arith.constant 0 : i32
    return %c0_i32, %c0_i32_0 : i32, i32
  }
  func.func @transform_2(%arg0: i32, %arg1: memref<3xi32, #tpu.memory_space<smem>>) -> (i32, i32) {
    %c0_i32 = arith.constant 0 : i32
    %c0_i32_0 = arith.constant 0 : i32
    %c0_i32_1 = arith.constant 0 : i32
    return %c0_i32, %c0_i32_0 : i32, i32
  }
  func.func @transform_3(%arg0: i32, %arg1: memref<3xi32, #tpu.memory_space<smem>>) -> (i32, i32) {
    %c0_i32 = arith.constant 0 : i32
    %c0_i32_0 = arith.constant 0 : i32
    %c0_i32_1 = arith.constant 0 : i32
    return %c0_i32, %c0_i32_0 : i32, i32
  }
  func.func @transform_4(%arg0: i32, %arg1: memref<3xi32, #tpu.memory_space<smem>>) -> (i32, i32) {
    %c0_i32 = arith.constant 0 : i32
    %c0_i32_0 = arith.constant 0 : i32
    %c0_i32_1 = arith.constant 0 : i32
    return %c0_i32, %c0_i32_0 : i32, i32
  }
  func.func @transform_5(%arg0: i32, %arg1: memref<3xi32, #tpu.memory_space<smem>>) -> (i32, i32) {
    %c0_i32 = arith.constant 0 : i32
    %c0_i32_0 = arith.constant 0 : i32
    %c0_i32_1 = arith.constant 0 : i32
    return %c0_i32, %c0_i32_0 : i32, i32
  }
  func.func @transform_6(%arg0: i32, %arg1: memref<3xi32, #tpu.memory_space<smem>>) -> (i32, i32) {
    %c0_i32 = arith.constant 0 : i32
    %c0_i32_0 = arith.constant 0 : i32
    %c0_i32_1 = arith.constant 0 : i32
    return %c0_i32, %c0_i32_0 : i32, i32
  }
  func.func @transform_7(%arg0: i32, %arg1: memref<3xi32, #tpu.memory_space<smem>>) -> (i32, i32) {
    %c0_i32 = arith.constant 0 : i32
    %c0_i32_0 = arith.constant 0 : i32
    %c0_i32_1 = arith.constant 0 : i32
    return %c0_i32, %c0_i32_0 : i32, i32
  }
  func.func @transform_8(%arg0: i32, %arg1: memref<3xi32, #tpu.memory_space<smem>>) -> (i32, i32) {
    %c0_i32 = arith.constant 0 : i32
    %c0_i32_0 = arith.constant 0 : i32
    %c0_i32_1 = arith.constant 0 : i32
    return %c0_i32, %c0_i32_0 : i32, i32
  }
  func.func @transform_9(%arg0: i32, %arg1: memref<3xi32, #tpu.memory_space<smem>>) -> (i32, i32) {
    %c0_i32 = arith.constant 0 : i32
    %c0_i32_0 = arith.constant 0 : i32
    return %arg0, %c0_i32 : i32, i32
  }
}

</mosaic_0001>

<bundles_post_ra>
// kernel: tpu_custom_call.1
= control target key start
LH: loop header
LB: loop body
LE: loop exit
PB: predicated region body
PF: predicated region fallthrough
CT: control target
= control target key end

     0   :  { %s853_s13 = smov [#allocation3]   ;;  %s997_s0 = inlined_call_operand.hbm [shape: s32[3], index: 0, kind: input, shape index: {}]   ;;  %s998_s1 = inlined_call_operand.hbm [shape: f32[8,16], index: 1, kind: input, shape index: {}]   ;;  %s999_s2 = inlined_call_operand.hbm [shape: bf16[16,128], index: 2, kind: input, shape index: {}]   ;;  %s1000_s3 = inlined_call_operand.vmem [shape: f32[1,128], index: 3, kind: input, shape index: {}]   ;;  %s1001_s4 = inlined_call_operand.hbm [shape: bf16[128,128], index: 4, kind: input, shape index: {}]   ;;  %s1002_s5 = inlined_call_operand.vmem [shape: f32[1,128], index: 5, kind: input, shape index: {}]   ;;  %s1003_s6 = inlined_call_operand.hbm [shape: bf16[128,128], index: 6, kind: input, shape index: {}]   ;;  %s1004_s7 = inlined_call_operand.vmem [shape: f32[1,128], index: 7, kind: input, shape index: {}]   ;;  %s1005_s8 = inlined_call_operand.hbm [shape: bf16[128,128], index: 8, kind: input, shape index: {}]   ;;  %s1006_s9 = inlined_call_operand.vmem [shape: f32[1,128], index: 9, kind: input, shape index: {}]   ;;  %s1007_s10 = inlined_call_operand.hbm [shape: f32[8,128], index: 10, kind: output, shape index: {}]  }
   0x1   :  { %16 = dma.hbm_to_smem %s997_s0, 16, %s853_s13, [#allocation2] }
   0x2   :  { %843 = dma.done.wait [#allocation2], 16 }
   0x3   :  { %844 = vsyncadd [#allocation2], 4294967280 }
   0x4   :  { %18 = sfence }
   0x5   :  { %19 = vsyncpa [#allocation5], 0 }
   0x6   :  { %20 = vsyncpa [#allocation8], 0 }
   0x7   :  { %21 = vsyncpa [#allocation11], 0 }
   0x8   :  { %22 = vsyncpa [#allocation6], 0  ;;  %s854_s16 = smov [#allocation7]  }
   0x9   :  { %s38_s17 = sshll.u32 %s854_s16, 4  ;;  %s39_s17 = int_to_ptr.vmem [resolvable:$true] %s38_s17 }
   0xa   :  { %s731_s18 = scalar_lea.vmem %s39_s17, 128  ;;  %p736_p1 = scmp.lt.s32.totalorder %s39_s17, %s39_s17 }
   0xb   :  { %p732_p0 = scmp.ne.s32.totalorder %s39_s17, %s731_s18  ;;  %p737_p2 = scmp.lt.s32.totalorder %s731_s18, %s731_s18 }
   0xd   :  { %p738_p3 = por %p737_p2, %p736_p1 }
   0xf   :  { %p739_p4 = pnand %p738_p3, %p732_p0 }
  0x11   :  { %742 = shalt.err (!%p739_p4)
}
  0x12   :  { %s855_s19 = smov 64   ;;  %s856_s20 = smov 4  }
  0x13   :  { %44 = dma.hbm_to_vmem [thread:$0]  %s999_s2, 128, %s39_s17, [#allocation8], %s855_s19, %s855_s19, %s856_s20  }
  0x14   :  { %s857_s22 = smov [#allocation10]   ;;  %s858_s24 = smov [#allocation4]  }
  0x15   :  { %s66_s23 = sshll.u32 %s857_s22, 4  ;;  %s29_s25 = sshll.u32 %s858_s24, 4  ;;  %s67_s23 = int_to_ptr.vmem [resolvable:$true] %s66_s23  ;;  %s30_s25 = int_to_ptr.vmem [resolvable:$true] %s29_s25 }
  0x16   :  { %s751_s26 = scalar_lea.vmem %s67_s23, 1024  ;;  %p756_p6 = scmp.lt.s32.totalorder %s67_s23, %s67_s23 }
  0x17   :  { %p752_p5 = scmp.ne.s32.totalorder %s67_s23, %s751_s26  ;;  %p757_p7 = scmp.lt.s32.totalorder %s751_s26, %s751_s26 }
  0x19   :  { %p758_p8 = por %p757_p7, %p756_p6 }
  0x1b   :  { %p759_p9 = pnand %p758_p8, %p752_p5 }
  0x1d   :  { %762 = shalt.err (!%p759_p9)
}
  0x1e   :  { %72 = dma.hbm_to_vmem [thread:$0]  %s1003_s6, 1024, %s67_s23, [#allocation11], %s855_s19, %s855_s19, %s856_s20  }
  0x1f   :  { %s771_s2 = scalar_lea.vmem %s30_s25, 128  ;;  %p776_p11 = scmp.lt.s32.totalorder %s30_s25, %s30_s25 }
  0x20   :  { %p772_p10 = scmp.ne.s32.totalorder %s30_s25, %s771_s2  ;;  %p777_p12 = scmp.lt.s32.totalorder %s771_s2, %s771_s2 }
  0x22   :  { %p778_p13 = por %p777_p12, %p776_p11 }
  0x24   :  { %p779_p0 = pnand %p778_p13, %p772_p10 }
  0x26   :  { %782 = shalt.err (!%p779_p0)
}
  0x27   :  { %32 = dma.hbm_to_vmem [thread:$0]  %s998_s1, 128, %s30_s25, [#allocation5]  }
  0x28   :  { %s859_s11 = smov [#allocation9]   ;;  %s860_s13 = smov [#allocation12]  }
  0x29   :  { %s52_s12 = sshll.u32 %s859_s11, 4  ;;  %s80_s14 = sshll.u32 %s860_s13, 4  ;;  %s53_s12 = int_to_ptr.vmem [resolvable:$true] %s52_s12  ;;  %s81_s14 = int_to_ptr.vmem [resolvable:$true] %s80_s14 }
  0x2a   :  { %s791_s15 = scalar_lea.vmem %s53_s12, 1024  ;;  %p796_p2 = scmp.lt.s32.totalorder %s53_s12, %s53_s12 }
  0x2b   :  { %p792_p1 = scmp.ne.s32.totalorder %s53_s12, %s791_s15  ;;  %p797_p3 = scmp.lt.s32.totalorder %s791_s15, %s791_s15 }
  0x2d   :  { %p798_p4 = por %p797_p3, %p796_p2 }
  0x2f   :  { %p799_p5 = pnand %p798_p4, %p792_p1 }
  0x31   :  { %802 = shalt.err (!%p799_p5)
}
  0x32   :  { %58 = dma.hbm_to_vmem [thread:$0]  %s1001_s4, 1024, %s53_s12, [#allocation8], %s855_s19, %s855_s19, %s856_s20  }
  0x33   :  { %s811_s1 = scalar_lea.vmem %s81_s14, 1024  ;;  %p816_p7 = scmp.lt.s32.totalorder %s81_s14, %s81_s14 }
  0x34   :  { %p812_p6 = scmp.ne.s32.totalorder %s81_s14, %s811_s1  ;;  %p817_p8 = scmp.lt.s32.totalorder %s811_s1, %s811_s1 }
  0x36   :  { %p818_p9 = por %p817_p8, %p816_p7 }
  0x38   :  { %p819_p10 = pnand %p818_p9, %p812_p6 }
  0x3a   :  { %822 = shalt.err (!%p819_p10)
}
  0x3b   :  { %86 = dma.hbm_to_vmem [thread:$0]  %s1005_s8, 1024, %s81_s14, [#allocation11], %s855_s19, %s855_s19, %s856_s20  }
  0x3c   :  { %845 = dma.done.wait [#allocation5], 128  }
  0x3d   :  { %846 = vsyncadd [#allocation5], 4294967168 }
  0x3e   :  { %847 = dma.done.wait [#allocation8], 1152  }
  0x3f   :  { %848 = vsyncadd [#allocation8], 4294966144 }
  0x40   :  { %849 = dma.done.wait [#allocation11], 2048  }
  0x41   :  { %850 = vsyncadd [#allocation11], 4294965248  ;;  %v861_v0 = vmov 0.0   ;;  %vm862_vm0 = vmmov 0   ;;  %v690_v1 = vld [vmem:[#allocation7] sm:$0xff]   ;;  %v105_v2 = vld [vmem:[#allocation4] sm:$0xff]  ;;  %v107_v18 = vlaneseq }
  0x42   :  { %613 = vmatprep.subr.bf16.mxu0 %v861_v0  ;;  %615 = vmatprep.mubr.msk.bf16.mxu0 %vm862_vm0, %v861_v0  ;;  %v106_v3 = vpack.c.bf16 %v105_v2, %v105_v2  ;;  %vm124_vm1 = vcmask 130048   ;;  %v691_v4 = vld [vmem:[#allocation9 + $0x38] sm:$0xff]   ;;  %v692_v5 = vld [vmem:[#allocation9 + $0x30] sm:$0xff]   ;;  %v693_v6 = vld [vmem:[#allocation9 + $0x28] sm:$0xff]   ;;  %s168_s4 = sld [smem:[#allocation3]]  ;;  %s863_s25 = smov [#allocation13]  }
  0x43   :  { %619 = vmatprep.subr.bf16.mxu1 %v861_v0  ;;  %635 = vmatprep.mubr.msk.bf16.mxu1 %vm862_vm0, %v861_v0  ;;  %v694_v7 = vld [vmem:[#allocation9 + $0x20] sm:$0xff]   ;;  %v695_v8 = vld [vmem:[#allocation9 + $0x18] sm:$0xff]   ;;  %v696_v9 = vld [vmem:[#allocation9 + $0x10] sm:$0xff]   ;;  %v108_v19 = vand.u32 127, %v107_v18  ;;  %s571_s21 = sld [smem:[#allocation3 + $0x2]]  ;;  %s532_s26 = sshll.u32 %s863_s25, 4  ;;  %s533_s26 = int_to_ptr.vmem [resolvable:$true] %s532_s26 }
  0x44   :  { %614 = vmatpush3.bf16.msra.mxu0 %v690_v1  ;;  %620 = vmatpush3.bf16.msra.mxu1 %v691_v4  ;;  %v697_v10 = vld [vmem:[#allocation9 + $0x8] sm:$0xff]   ;;  %v698_v11 = vld [vmem:[#allocation9] sm:$0xff]   ;;  %v699_v12 = vld [vmem:[#allocation10 + $0x38] sm:$0xff]   ;;  %p828_p12 = scmp.lt.s32.totalorder %s533_s26, %s533_s26 }
  0x45   :  { %639 = vmatprep.subr.bf16.mxu0 %v861_v0  ;;  %621 = vmatprep.subr.bf16.mxu1 %v861_v0  ;;  %v700_v13 = vld [vmem:[#allocation10 + $0x30] sm:$0xff]   ;;  %v701_v14 = vld [vmem:[#allocation10 + $0x28] sm:$0xff]   ;;  %v702_v15 = vld [vmem:[#allocation10 + $0x20] sm:$0xff]  }
  0x46   :  { %v703_v16 = vld [vmem:[#allocation10 + $0x18] sm:$0xff]   ;;  %v704_v17 = vld [vmem:[#allocation10 + $0x10] sm:$0xff]   ;;  %v705_v29 = vld [vmem:[#allocation10 + $0x8] sm:$0xff]  }
  0x47   :  { %616 = vmatmul.mubr.msk.bf16.vlgmr.msra.gmra.mxu0 %vm124_vm1, %v106_v3  ;;  %v543_v20 = vld [vmem:[%s1000_s3] ss:$0 sm:$0xff]  ;;  %v706_v30 = vld [vmem:[#allocation10] sm:$0xff]   ;;  %v707_v31 = vld [vmem:[#allocation12 + $0x38] sm:$0xff]   ;;  %s558_s3 = sld [smem:[#allocation3 + $0x1]] }
  0x48   :  { %655 = vmatprep.mubr.msk.bf16.mxu0 %vm862_vm0, %v861_v0  ;;  %622 = vmatpush3.bf16.msra.mxu1 %v692_v5  ;;  %v169_v21 = vstv %s168_s4  ;;  %v708_v32 = vld [vmem:[#allocation12 + $0x30] sm:$0xff]   ;;  %v709_v33 = vld [vmem:[#allocation12 + $0x28] sm:$0xff]   ;;  %v710_v34 = vld [vmem:[#allocation12 + $0x20] sm:$0xff]  }
  0x49   :  { %623 = vmatprep.subr.bf16.mxu1 %v861_v0  ;;  %640 = vmatpush3.bf16.msra.mxu0 %v699_v12  ;;  %vm170_vm2 = vcmp.lt.s32.totalorder %v108_v19, %v169_v21  ;;  %v711_v35 = vld [vmem:[#allocation12 + $0x18] sm:$0xff]   ;;  %v712_v36 = vld [vmem:[#allocation12 + $0x10] sm:$0xff]   ;;  %v713_v46 = vld [vmem:[#allocation12 + $0x8] sm:$0xff]   ;;  %v407_v49 = vstv %s571_s21 }
  0x4a   :  { %641 = vmatprep.subr.bf16.mxu0 %v861_v0  ;;  %vm555_vm3 = vmpackc.low %vm170_vm2, %vm170_vm2  ;;  %v546_v37 = vld [vmem:[%s1002_s5] ss:$0 sm:$0xff]  ;;  %v714_v47 = vld [vmem:[#allocation12] sm:$0xff]   ;;  %vm408_vm6 = vcmp.lt.s32.totalorder %v108_v19, %v407_v49 }
  0x4b   :  { %v559_v48 = vld [vmem:[%s1004_s7] ss:$0 sm:$0xff]  ;;  %vm581_vm7 = vmpackc.low %vm408_vm6, %vm408_vm6  ;;  %s823_s7 = scalar_lea.vmem %s533_s26, 128 }
  0x4c   :  { %624 = vmatpush3.bf16.msra.mxu1 %v693_v6  ;;  %v572_v57 = vld [vmem:[%s1006_s9] ss:$0 sm:$0xff]  ;;  %p824_p11 = scmp.ne.s32.totalorder %s533_s26, %s823_s7  ;;  %p829_p13 = scmp.lt.s32.totalorder %s823_s7, %s823_s7 }
  0x4d   :  { %625 = vmatprep.subr.bf16.mxu1 %v861_v0  ;;  %642 = vmatpush3.bf16.msra.mxu0 %v700_v13  ;;  %v288_v38 = vstv %s558_s3 }
  0x4e   :  { %643 = vmatprep.subr.bf16.mxu0 %v861_v0  ;;  %vm289_vm4 = vcmp.lt.s32.totalorder %v108_v19, %v288_v38  ;;  %p830_p0 = por %p829_p13, %p828_p12 }
  0x4f   :  { %vm568_vm5 = vmpackc.low %vm289_vm4, %vm289_vm4 }
  0x50   :  { %626 = vmatpush3.bf16.msra.mxu1 %v694_v7  ;;  %p831_p1 = pnand %p830_p0, %p824_p11 }
  0x51   :  { %627 = vmatprep.subr.bf16.mxu1 %v861_v0  ;;  %644 = vmatpush3.bf16.msra.mxu0 %v701_v14 }
  0x52   :  { %645 = vmatprep.subr.bf16.mxu0 %v861_v0 }
  0x54   :  { %628 = vmatpush3.bf16.msra.mxu1 %v695_v8 }
  0x55   :  { %629 = vmatprep.subr.bf16.mxu1 %v861_v0  ;;  %646 = vmatpush3.bf16.msra.mxu0 %v702_v15 }
  0x56   :  { %647 = vmatprep.subr.bf16.mxu0 %v861_v0 }
  0x58   :  { %630 = vmatpush3.bf16.msra.mxu1 %v696_v9 }
  0x59   :  { %631 = vmatprep.subr.bf16.mxu1 %v861_v0  ;;  %648 = vmatpush3.bf16.msra.mxu0 %v703_v16 }
  0x5a   :  { %649 = vmatprep.subr.bf16.mxu0 %v861_v0 }
  0x5c   :  { %632 = vmatpush3.bf16.msra.mxu1 %v697_v10 }
  0x5d   :  { %633 = vmatprep.subr.bf16.mxu1 %v861_v0  ;;  %650 = vmatpush3.bf16.msra.mxu0 %v704_v17 }
  0x5e   :  { %651 = vmatprep.subr.bf16.mxu0 %v861_v0 }
  0x60   :  { %634 = vmatpush3.bf16.msra.mxu1 %v698_v11 }
  0x61   :  { %659 = vmatprep.subr.bf16.mxu1 %v861_v0  ;;  %652 = vmatpush3.bf16.msra.mxu0 %v705_v29 }
  0x62   :  { %653 = vmatprep.subr.bf16.mxu0 %v861_v0 }
  0x65   :  { %654 = vmatpush3.bf16.msra.mxu0 %v706_v30 }
 0x107   :  { %v162_v22 = vpop.f32.mrf.mxu0 }
 0x108   :  { %v163_v23 = vadd.f32 %v543_v20, %v162_v22 }
 0x109   :  { %v617_v24 = vpop.f32.mrf.mxu0 }
 0x10a   :  { %v171_v25 = vmax.f32 %v163_v23, 0.0 }
 0x10b   :  { %v165_v26 = vpop.f32.mrf.mxu0 }
 0x10c   :  { %v556_v27 = vpack.c.bf16 %v171_v25, %v171_v25 }
 0x10d   :  { %v618_v28 = vpop.f32.mrf.mxu0 }
 0x10e   :  { %636 = vmatmul.mubr.msk.bf16.vlgmr.msra.gmra.mxu1 %vm555_vm3, %v556_v27 }
 0x10f   :  { %675 = vmatprep.mubr.msk.bf16.mxu1 %vm862_vm0, %v861_v0  ;;  %660 = vmatpush3.bf16.msra.mxu1 %v707_v31 }
 0x110   :  { %661 = vmatprep.subr.bf16.mxu1 %v861_v0 }
 0x113   :  { %662 = vmatpush3.bf16.msra.mxu1 %v708_v32 }
 0x114   :  { %663 = vmatprep.subr.bf16.mxu1 %v861_v0 }
 0x117   :  { %664 = vmatpush3.bf16.msra.mxu1 %v709_v33 }
 0x118   :  { %665 = vmatprep.subr.bf16.mxu1 %v861_v0 }
 0x11b   :  { %666 = vmatpush3.bf16.msra.mxu1 %v710_v34 }
 0x11c   :  { %667 = vmatprep.subr.bf16.mxu1 %v861_v0 }
 0x11f   :  { %668 = vmatpush3.bf16.msra.mxu1 %v711_v35 }
 0x120   :  { %669 = vmatprep.subr.bf16.mxu1 %v861_v0 }
 0x123   :  { %670 = vmatpush3.bf16.msra.mxu1 %v712_v36 }
 0x124   :  { %671 = vmatprep.subr.bf16.mxu1 %v861_v0 }
 0x127   :  { %672 = vmatpush3.bf16.msra.mxu1 %v713_v46 }
 0x128   :  { %673 = vmatprep.subr.bf16.mxu1 %v861_v0 }
 0x12b   :  { %674 = vmatpush3.bf16.msra.mxu1 %v714_v47 }
 0x1ce   :  { %v281_v39 = vpop.f32.mrf.mxu1 }
 0x1cf   :  { %v282_v40 = vadd.f32 %v546_v37, %v281_v39 }
 0x1d0   :  { %v637_v41 = vpop.f32.mrf.mxu1 }
 0x1d1   :  { %v290_v42 = vmax.f32 %v282_v40, 0.0 }
 0x1d2   :  { %v284_v43 = vpop.f32.mrf.mxu1 }
 0x1d3   :  { %v569_v44 = vpack.c.bf16 %v290_v42, %v290_v42 }
 0x1d4   :  { %v638_v45 = vpop.f32.mrf.mxu1 }
 0x1d5   :  { %656 = vmatmul.mubr.msk.bf16.vlgmr.msra.gmra.mxu0 %vm568_vm5, %v569_v44 }
 0x295   :  { %v400_v50 = vpop.f32.mrf.mxu0 }
 0x296   :  { %v401_v51 = vadd.f32 %v559_v48, %v400_v50 }
 0x297   :  { %v657_v52 = vpop.f32.mrf.mxu0 }
 0x298   :  { %v409_v53 = vmax.f32 %v401_v51, 0.0 }
 0x299   :  { %v403_v54 = vpop.f32.mrf.mxu0 }
 0x29a   :  { %v582_v55 = vpack.c.bf16 %v409_v53, %v409_v53 }
 0x29b   :  { %v658_v56 = vpop.f32.mrf.mxu0 }
 0x29c   :  { %676 = vmatmul.mubr.msk.bf16.vlgmr.msra.gmra.mxu1 %vm581_vm7, %v582_v55 }
 0x35c   :  { %v519_v58 = vpop.f32.mrf.mxu1 }
 0x35d   :  { %v520_v59 = vadd.f32 %v572_v57, %v519_v58 }
 0x35e   :  { %v677_v60 = vpop.f32.mrf.mxu1 }
 0x35f   :  { %525 = vst [vmem:[#allocation13] sm:$0xff] %v520_v59 }
 0x360   :  { %v522_v61 = vpop.f32.mrf.mxu1 }
 0x361   :  { %834 = shalt.err (!%p831_p1)
}
 0x362   :  { %535 = dma.vmem_to_hbm [thread:$0]  %s533_s26, 128, %s1007_s10, [#allocation6]   ;;  %v678_v62 = vpop.f32.mrf.mxu1 }
 0x363   :  { %851 = dma.done.wait [#allocation6], 128  }
 0x364   :  { %852 = vsyncadd [#allocation6], 4294967168 }
 0x365   :  { %539 = vsyncpa [#allocation5], 1 }
 0x366   :  { %540 = vsyncpa [#allocation8], 1 }
 0x367   :  { %541 = vsyncpa [#allocation11], 1 }
 0x368   :  { %542 = vsyncpa [#allocation6], 1 }

// kernel: tpu_custom_call.1
= control target key start
LH: loop header
LB: loop body
LE: loop exit
PB: predicated region body
PF: predicated region fallthrough
CT: control target
= control target key end

     0   :  { %s853_s13 = smov [#allocation3]   ;;  %s997_s0 = inlined_call_operand.hbm [shape: s32[3], index: 0, kind: input, shape index: {}]   ;;  %s998_s1 = inlined_call_operand.hbm [shape: f32[8,16], index: 1, kind: input, shape index: {}]   ;;  %s999_s2 = inlined_call_operand.hbm [shape: bf16[16,128], index: 2, kind: input, shape index: {}]   ;;  %s1000_s3 = inlined_call_operand.vmem [shape: f32[1,128], index: 3, kind: input, shape index: {}]   ;;  %s1001_s4 = inlined_call_operand.hbm [shape: bf16[128,128], index: 4, kind: input, shape index: {}]   ;;  %s1002_s5 = inlined_call_operand.vmem [shape: f32[1,128], index: 5, kind: input, shape index: {}]   ;;  %s1003_s6 = inlined_call_operand.hbm [shape: bf16[128,128], index: 6, kind: input, shape index: {}]   ;;  %s1004_s7 = inlined_call_operand.vmem [shape: f32[1,128], index: 7, kind: input, shape index: {}]   ;;  %s1005_s8 = inlined_call_operand.hbm [shape: bf16[128,128], index: 8, kind: input, shape index: {}]   ;;  %s1006_s9 = inlined_call_operand.vmem [shape: f32[1,128], index: 9, kind: input, shape index: {}]   ;;  %s1007_s10 = inlined_call_operand.hbm [shape: f32[8,128], index: 10, kind: output, shape index: {}]  }
   0x1   :  { %16 = dma.hbm_to_smem %s997_s0, 16, %s853_s13, [#allocation2] }
   0x2   :  { %843 = dma.done.wait [#allocation2], 16 }
   0x3   :  { %844 = vsyncadd [#allocation2], 4294967280 }
   0x4   :  { %18 = sfence }
   0x5   :  { %19 = vsyncpa [#allocation5], 0 }
   0x6   :  { %20 = vsyncpa [#allocation8], 0 }
   0x7   :  { %21 = vsyncpa [#allocation11], 0 }
   0x8   :  { %22 = vsyncpa [#allocation6], 0  ;;  %s854_s16 = smov [#allocation7]  }
   0x9   :  { %s38_s17 = sshll.u32 %s854_s16, 4  ;;  %s39_s17 = int_to_ptr.vmem [resolvable:$true] %s38_s17 }
   0xa   :  { %s731_s18 = scalar_lea.vmem %s39_s17, 128  ;;  %p736_p1 = scmp.lt.s32.totalorder %s39_s17, %s39_s17 }
   0xb   :  { %p732_p0 = scmp.ne.s32.totalorder %s39_s17, %s731_s18  ;;  %p737_p2 = scmp.lt.s32.totalorder %s731_s18, %s731_s18 }
   0xd   :  { %p738_p3 = por %p737_p2, %p736_p1 }
   0xf   :  { %p739_p4 = pnand %p738_p3, %p732_p0 }
  0x11   :  { %742 = shalt.err (!%p739_p4)
}
  0x12   :  { %s855_s19 = smov 64   ;;  %s856_s20 = smov 4  }
  0x13   :  { %44 = dma.hbm_to_vmem [thread:$0]  %s999_s2, 128, %s39_s17, [#allocation8], %s855_s19, %s855_s19, %s856_s20  }
  0x14   :  { %s857_s22 = smov [#allocation10]   ;;  %s858_s24 = smov [#allocation4]  }
  0x15   :  { %s66_s23 = sshll.u32 %s857_s22, 4  ;;  %s29_s25 = sshll.u32 %s858_s24, 4  ;;  %s67_s23 = int_to_ptr.vmem [resolvable:$true] %s66_s23  ;;  %s30_s25 = int_to_ptr.vmem [resolvable:$true] %s29_s25 }
  0x16   :  { %s751_s26 = scalar_lea.vmem %s67_s23, 1024  ;;  %p756_p6 = scmp.lt.s32.totalorder %s67_s23, %s67_s23 }
  0x17   :  { %p752_p5 = scmp.ne.s32.totalorder %s67_s23, %s751_s26  ;;  %p757_p7 = scmp.lt.s32.totalorder %s751_s26, %s751_s26 }
  0x19   :  { %p758_p8 = por %p757_p7, %p756_p6 }
  0x1b   :  { %p759_p9 = pnand %p758_p8, %p752_p5 }
  0x1d   :  { %762 = shalt.err (!%p759_p9)
}
  0x1e   :  { %72 = dma.hbm_to_vmem [thread:$0]  %s1003_s6, 1024, %s67_s23, [#allocation11], %s855_s19, %s855_s19, %s856_s20  }
  0x1f   :  { %s771_s2 = scalar_lea.vmem %s30_s25, 128  ;;  %p776_p11 = scmp.lt.s32.totalorder %s30_s25, %s30_s25 }
  0x20   :  { %p772_p10 = scmp.ne.s32.totalorder %s30_s25, %s771_s2  ;;  %p777_p12 = scmp.lt.s32.totalorder %s771_s2, %s771_s2 }
  0x22   :  { %p778_p13 = por %p777_p12, %p776_p11 }
  0x24   :  { %p779_p0 = pnand %p778_p13, %p772_p10 }
  0x26   :  { %782 = shalt.err (!%p779_p0)
}
  0x27   :  { %32 = dma.hbm_to_vmem [thread:$0]  %s998_s1, 128, %s30_s25, [#allocation5]  }
  0x28   :  { %s859_s11 = smov [#allocation9]   ;;  %s860_s13 = smov [#allocation12]  }
  0x29   :  { %s52_s12 = sshll.u32 %s859_s11, 4  ;;  %s80_s14 = sshll.u32 %s860_s13, 4  ;;  %s53_s12 = int_to_ptr.vmem [resolvable:$true] %s52_s12  ;;  %s81_s14 = int_to_ptr.vmem [resolvable:$true] %s80_s14 }
  0x2a   :  { %s791_s15 = scalar_lea.vmem %s53_s12, 1024  ;;  %p796_p2 = scmp.lt.s32.totalorder %s53_s12, %s53_s12 }
  0x2b   :  { %p792_p1 = scmp.ne.s32.totalorder %s53_s12, %s791_s15  ;;  %p797_p3 = scmp.lt.s32.totalorder %s791_s15, %s791_s15 }
  0x2d   :  { %p798_p4 = por %p797_p3, %p796_p2 }
  0x2f   :  { %p799_p5 = pnand %p798_p4, %p792_p1 }
  0x31   :  { %802 = shalt.err (!%p799_p5)
}
  0x32   :  { %58 = dma.hbm_to_vmem [thread:$0]  %s1001_s4, 1024, %s53_s12, [#allocation8], %s855_s19, %s855_s19, %s856_s20  }
  0x33   :  { %s811_s1 = scalar_lea.vmem %s81_s14, 1024  ;;  %p816_p7 = scmp.lt.s32.totalorder %s81_s14, %s81_s14 }
  0x34   :  { %p812_p6 = scmp.ne.s32.totalorder %s81_s14, %s811_s1  ;;  %p817_p8 = scmp.lt.s32.totalorder %s811_s1, %s811_s1 }
  0x36   :  { %p818_p9 = por %p817_p8, %p816_p7 }
  0x38   :  { %p819_p10 = pnand %p818_p9, %p812_p6 }
  0x3a   :  { %822 = shalt.err (!%p819_p10)
}
  0x3b   :  { %86 = dma.hbm_to_vmem [thread:$0]  %s1005_s8, 1024, %s81_s14, [#allocation11], %s855_s19, %s855_s19, %s856_s20  }
  0x3c   :  { %845 = dma.done.wait [#allocation5], 128  }
  0x3d   :  { %846 = vsyncadd [#allocation5], 4294967168 }
  0x3e   :  { %847 = dma.done.wait [#allocation8], 1152  }
  0x3f   :  { %848 = vsyncadd [#allocation8], 4294966144 }
  0x40   :  { %849 = dma.done.wait [#allocation11], 2048  }
  0x41   :  { %850 = vsyncadd [#allocation11], 4294965248  ;;  %v861_v0 = vmov 0.0   ;;  %vm862_vm0 = vmmov 0   ;;  %v690_v1 = vld [vmem:[#allocation7] sm:$0xff]   ;;  %v105_v2 = vld [vmem:[#allocation4] sm:$0xff]  ;;  %v107_v18 = vlaneseq }
  0x42   :  { %613 = vmatprep.subr.bf16.mxu0 %v861_v0  ;;  %615 = vmatprep.mubr.msk.bf16.mxu0 %vm862_vm0, %v861_v0  ;;  %v106_v3 = vpack.c.bf16 %v105_v2, %v105_v2  ;;  %vm124_vm1 = vcmask 130048   ;;  %v691_v4 = vld [vmem:[#allocation9 + $0x38] sm:$0xff]   ;;  %v692_v5 = vld [vmem:[#allocation9 + $0x30] sm:$0xff]   ;;  %v693_v6 = vld [vmem:[#allocation9 + $0x28] sm:$0xff]   ;;  %s168_s4 = sld [smem:[#allocation3]]  ;;  %s863_s25 = smov [#allocation13]  }
  0x43   :  { %619 = vmatprep.subr.bf16.mxu1 %v861_v0  ;;  %635 = vmatprep.mubr.msk.bf16.mxu1 %vm862_vm0, %v861_v0  ;;  %v694_v7 = vld [vmem:[#allocation9 + $0x20] sm:$0xff]   ;;  %v695_v8 = vld [vmem:[#allocation9 + $0x18] sm:$0xff]   ;;  %v696_v9 = vld [vmem:[#allocation9 + $0x10] sm:$0xff]   ;;  %v108_v19 = vand.u32 127, %v107_v18  ;;  %s571_s21 = sld [smem:[#allocation3 + $0x2]]  ;;  %s532_s26 = sshll.u32 %s863_s25, 4  ;;  %s533_s26 = int_to_ptr.vmem [resolvable:$true] %s532_s26 }
  0x44   :  { %614 = vmatpush3.bf16.msra.mxu0 %v690_v1  ;;  %620 = vmatpush3.bf16.msra.mxu1 %v691_v4  ;;  %v697_v10 = vld [vmem:[#allocation9 + $0x8] sm:$0xff]   ;;  %v698_v11 = vld [vmem:[#allocation9] sm:$0xff]   ;;  %v699_v12 = vld [vmem:[#allocation10 + $0x38] sm:$0xff]   ;;  %p828_p12 = scmp.lt.s32.totalorder %s533_s26, %s533_s26 }
  0x45   :  { %639 = vmatprep.subr.bf16.mxu0 %v861_v0  ;;  %621 = vmatprep.subr.bf16.mxu1 %v861_v0  ;;  %v700_v13 = vld [vmem:[#allocation10 + $0x30] sm:$0xff]   ;;  %v701_v14 = vld [vmem:[#allocation10 + $0x28] sm:$0xff]   ;;  %v702_v15 = vld [vmem:[#allocation10 + $0x20] sm:$0xff]  }
  0x46   :  { %v703_v16 = vld [vmem:[#allocation10 + $0x18] sm:$0xff]   ;;  %v704_v17 = vld [vmem:[#allocation10 + $0x10] sm:$0xff]   ;;  %v705_v29 = vld [vmem:[#allocation10 + $0x8] sm:$0xff]  }
  0x47   :  { %616 = vmatmul.mubr.msk.bf16.vlgmr.msra.gmra.mxu0 %vm124_vm1, %v106_v3  ;;  %v543_v20 = vld [vmem:[%s1000_s3] ss:$0 sm:$0xff]  ;;  %v706_v30 = vld [vmem:[#allocation10] sm:$0xff]   ;;  %v707_v31 = vld [vmem:[#allocation12 + $0x38] sm:$0xff]   ;;  %s558_s3 = sld [smem:[#allocation3 + $0x1]] }
  0x48   :  { %655 = vmatprep.mubr.msk.bf16.mxu0 %vm862_vm0, %v861_v0  ;;  %622 = vmatpush3.bf16.msra.mxu1 %v692_v5  ;;  %v169_v21 = vstv %s168_s4  ;;  %v708_v32 = vld [vmem:[#allocation12 + $0x30] sm:$0xff]   ;;  %v709_v33 = vld [vmem:[#allocation12 + $0x28] sm:$0xff]   ;;  %v710_v34 = vld [vmem:[#allocation12 + $0x20] sm:$0xff]  }
  0x49   :  { %623 = vmatprep.subr.bf16.mxu1 %v861_v0  ;;  %640 = vmatpush3.bf16.msra.mxu0 %v699_v12  ;;  %vm170_vm2 = vcmp.lt.s32.totalorder %v108_v19, %v169_v21  ;;  %v711_v35 = vld [vmem:[#allocation12 + $0x18] sm:$0xff]   ;;  %v712_v36 = vld [vmem:[#allocation12 + $0x10] sm:$0xff]   ;;  %v713_v46 = vld [vmem:[#allocation12 + $0x8] sm:$0xff]   ;;  %v407_v49 = vstv %s571_s21 }
  0x4a   :  { %641 = vmatprep.subr.bf16.mxu0 %v861_v0  ;;  %vm555_vm3 = vmpackc.low %vm170_vm2, %vm170_vm2  ;;  %v546_v37 = vld [vmem:[%s1002_s5] ss:$0 sm:$0xff]  ;;  %v714_v47 = vld [vmem:[#allocation12] sm:$0xff]   ;;  %vm408_vm6 = vcmp.lt.s32.totalorder %v108_v19, %v407_v49 }
  0x4b   :  { %v559_v48 = vld [vmem:[%s1004_s7] ss:$0 sm:$0xff]  ;;  %vm581_vm7 = vmpackc.low %vm408_vm6, %vm408_vm6  ;;  %s823_s7 = scalar_lea.vmem %s533_s26, 128 }
  0x4c   :  { %624 = vmatpush3.bf16.msra.mxu1 %v693_v6  ;;  %v572_v57 = vld [vmem:[%s1006_s9] ss:$0 sm:$0xff]  ;;  %p824_p11 = scmp.ne.s32.totalorder %s533_s26, %s823_s7  ;;  %p829_p13 = scmp.lt.s32.totalorder %s823_s7, %s823_s7 }
  0x4d   :  { %625 = vmatprep.subr.bf16.mxu1 %v861_v0  ;;  %642 = vmatpush3.bf16.msra.mxu0 %v700_v13  ;;  %v288_v38 = vstv %s558_s3 }
  0x4e   :  { %643 = vmatprep.subr.bf16.mxu0 %v861_v0  ;;  %vm289_vm4 = vcmp.lt.s32.totalorder %v108_v19, %v288_v38  ;;  %p830_p0 = por %p829_p13, %p828_p12 }
  0x4f   :  { %vm568_vm5 = vmpackc.low %vm289_vm4, %vm289_vm4 }
  0x50   :  { %626 = vmatpush3.bf16.msra.mxu1 %v694_v7  ;;  %p831_p1 = pnand %p830_p0, %p824_p11 }
  0x51   :  { %627 = vmatprep.subr.bf16.mxu1 %v861_v0  ;;  %644 = vmatpush3.bf16.msra.mxu0 %v701_v14 }
  0x52   :  { %645 = vmatprep.subr.bf16.mxu0 %v861_v0 }
  0x54   :  { %628 = vmatpush3.bf16.msra.mxu1 %v695_v8 }
  0x55   :  { %629 = vmatprep.subr.bf16.mxu1 %v861_v0  ;;  %646 = vmatpush3.bf16.msra.mxu0 %v702_v15 }
  0x56   :  { %647 = vmatprep.subr.bf16.mxu0 %v861_v0 }
  0x58   :  { %630 = vmatpush3.bf16.msra.mxu1 %v696_v9 }
  0x59   :  { %631 = vmatprep.subr.bf16.mxu1 %v861_v0  ;;  %648 = vmatpush3.bf16.msra.mxu0 %v703_v16 }
  0x5a   :  { %649 = vmatprep.subr.bf16.mxu0 %v861_v0 }
  0x5c   :  { %632 = vmatpush3.bf16.msra.mxu1 %v697_v10 }
  0x5d   :  { %633 = vmatprep.subr.bf16.mxu1 %v861_v0  ;;  %650 = vmatpush3.bf16.msra.mxu0 %v704_v17 }
  0x5e   :  { %651 = vmatprep.subr.bf16.mxu0 %v861_v0 }
  0x60   :  { %634 = vmatpush3.bf16.msra.mxu1 %v698_v11 }
  0x61   :  { %659 = vmatprep.subr.bf16.mxu1 %v861_v0  ;;  %652 = vmatpush3.bf16.msra.mxu0 %v705_v29 }
  0x62   :  { %653 = vmatprep.subr.bf16.mxu0 %v861_v0 }
  0x65   :  { %654 = vmatpush3.bf16.msra.mxu0 %v706_v30 }
 0x107   :  { %v162_v22 = vpop.f32.mrf.mxu0 }
 0x108   :  { %v163_v23 = vadd.f32 %v543_v20, %v162_v22 }
 0x109   :  { %v617_v24 = vpop.f32.mrf.mxu0 }
 0x10a   :  { %v171_v25 = vmax.f32 %v163_v23, 0.0 }
 0x10b   :  { %v165_v26 = vpop.f32.mrf.mxu0 }
 0x10c   :  { %v556_v27 = vpack.c.bf16 %v171_v25, %v171_v25 }
 0x10d   :  { %v618_v28 = vpop.f32.mrf.mxu0 }
 0x10e   :  { %636 = vmatmul.mubr.msk.bf16.vlgmr.msra.gmra.mxu1 %vm555_vm3, %v556_v27 }
 0x10f   :  { %675 = vmatprep.mubr.msk.bf16.mxu1 %vm862_vm0, %v861_v0  ;;  %660 = vmatpush3.bf16.msra.mxu1 %v707_v31 }
 0x110   :  { %661 = vmatprep.subr.bf16.mxu1 %v861_v0 }
 0x113   :  { %662 = vmatpush3.bf16.msra.mxu1 %v708_v32 }
 0x114   :  { %663 = vmatprep.subr.bf16.mxu1 %v861_v0 }
 0x117   :  { %664 = vmatpush3.bf16.msra.mxu1 %v709_v33 }
 0x118   :  { %665 = vmatprep.subr.bf16.mxu1 %v861_v0 }
 0x11b   :  { %666 = vmatpush3.bf16.msra.mxu1 %v710_v34 }
 0x11c   :  { %667 = vmatprep.subr.bf16.mxu1 %v861_v0 }
 0x11f   :  { %668 = vmatpush3.bf16.msra.mxu1 %v711_v35 }
 0x120   :  { %669 = vmatprep.subr.bf16.mxu1 %v861_v0 }
 0x123   :  { %670 = vmatpush3.bf16.msra.mxu1 %v712_v36 }
 0x124   :  { %671 = vmatprep.subr.bf16.mxu1 %v861_v0 }
 0x127   :  { %672 = vmatpush3.bf16.msra.mxu1 %v713_v46 }
 0x128   :  { %673 = vmatprep.subr.bf16.mxu1 %v861_v0 }
 0x12b   :  { %674 = vmatpush3.bf16.msra.mxu1 %v714_v47 }
 0x1ce   :  { %v281_v39 = vpop.f32.mrf.mxu1 }
 0x1cf   :  { %v282_v40 = vadd.f32 %v546_v37, %v281_v39 }
 0x1d0   :  { %v637_v41 = vpop.f32.mrf.mxu1 }
 0x1d1   :  { %v290_v42 = vmax.f32 %v282_v40, 0.0 }
 0x1d2   :  { %v284_v43 = vpop.f32.mrf.mxu1 }
 0x1d3   :  { %v569_v44 = vpack.c.bf16 %v290_v42, %v290_v42 }
 0x1d4   :  { %v638_v45 = vpop.f32.mrf.mxu1 }
 0x1d5   :  { %656 = vmatmul.mubr.msk.bf16.vlgmr.msra.gmra.mxu0 %vm568_vm5, %v569_v44 }
 0x295   :  { %v400_v50 = vpop.f32.mrf.mxu0 }
 0x296   :  { %v401_v51 = vadd.f32 %v559_v48, %v400_v50 }
 0x297   :  { %v657_v52 = vpop.f32.mrf.mxu0 }
 0x298   :  { %v409_v53 = vmax.f32 %v401_v51, 0.0 }
 0x299   :  { %v403_v54 = vpop.f32.mrf.mxu0 }
 0x29a   :  { %v582_v55 = vpack.c.bf16 %v409_v53, %v409_v53 }
 0x29b   :  { %v658_v56 = vpop.f32.mrf.mxu0 }
 0x29c   :  { %676 = vmatmul.mubr.msk.bf16.vlgmr.msra.gmra.mxu1 %vm581_vm7, %v582_v55 }
 0x35c   :  { %v519_v58 = vpop.f32.mrf.mxu1 }
 0x35d   :  { %v520_v59 = vadd.f32 %v572_v57, %v519_v58 }
 0x35e   :  { %v677_v60 = vpop.f32.mrf.mxu1 }
 0x35f   :  { %525 = vst [vmem:[#allocation13] sm:$0xff] %v520_v59 }
 0x360   :  { %v522_v61 = vpop.f32.mrf.mxu1 }
 0x361   :  { %834 = shalt.err (!%p831_p1)
}
 0x362   :  { %535 = dma.vmem_to_hbm [thread:$0]  %s533_s26, 128, %s1007_s10, [#allocation6]   ;;  %v678_v62 = vpop.f32.mrf.mxu1 }
 0x363   :  { %851 = dma.done.wait [#allocation6], 128  }
 0x364   :  { %852 = vsyncadd [#allocation6], 4294967168 }
 0x365   :  { %539 = vsyncpa [#allocation5], 1 }
 0x366   :  { %540 = vsyncpa [#allocation8], 1 }
 0x367   :  { %541 = vsyncpa [#allocation11], 1 }
 0x368   :  { %542 = vsyncpa [#allocation6], 1 }

</bundles_post_ra>
